<compile_context>
chip_gen: v7x
topology: tpu7x:2x2x1
jax: 0.10.0
libtpu: 0.0.40
codegen_flags: <defaults>
</compile_context>

<pallas_src>
import functools
import math

import jax
import jax.numpy as jnp
from jax.experimental import pallas as pl
from jax.experimental.pallas import tpu as pltpu


def _transformer_block_kernel(v_ref, k_ref, q_ref,
                              w_attn_ref, w_ff1_ref, w_ff2_ref,
                              prm_ref, b_ff1_ref,
                              o_ref, *, d_model, n_heads, eps):
    bf16 = jnp.bfloat16
    f32 = jnp.float32
    D = d_model
    Dh = D // n_heads
    scale = 1.0 / math.sqrt(Dh)

    x_v = v_ref[0]          # [S, D] f32
    x_k = k_ref[0]          # [S, D] f32
    x_q = q_ref[0]          # [S, D] f32

    w = w_attn_ref[...]     # [D, 4D] bf16, columns = Wq | Wk | Wv | Wo
    wq = w[:, 0 * D:1 * D]
    wk = w[:, 1 * D:2 * D]
    wv = w[:, 2 * D:3 * D]
    wo = w[:, 3 * D:4 * D]

    prm = prm_ref[...]      # [9, D] f32 fused per-channel params
    bq, bk, bv, bo = prm[0:1], prm[1:2], prm[2:3], prm[3:4]
    g1, be1 = prm[4:5], prm[5:6]
    g2, be2 = prm[6:7], prm[7:8]
    b_ff2 = prm[8:9]

    # ---- multi-head attention (bf16 MXU, f32 accumulate) ----
    q = jnp.dot(x_q.astype(bf16), wq, preferred_element_type=f32) + bq
    k = jnp.dot(x_k.astype(bf16), wk, preferred_element_type=f32) + bk
    v = jnp.dot(x_v.astype(bf16), wv, preferred_element_type=f32) + bv

    attn = None
    for h in range(n_heads):                       # static unrolled head loop
        lo = h * Dh
        qh = q[:, lo:lo + Dh].astype(bf16)
        kh = k[:, lo:lo + Dh].astype(bf16)
        vh = v[:, lo:lo + Dh].astype(bf16)
        # scores = qh @ kh.T  (contract last dims, no explicit transpose)
        s = jax.lax.dot_general(qh, kh, (((1,), (1,)), ((), ())),
                                preferred_element_type=f32) * scale   # [S, S]
        # TODO(synk): attention mask not applied (reference default mask=None).
        m = jnp.max(s, axis=-1, keepdims=True)
        e = jnp.exp(s - m)
        pa = e * pl.reciprocal(jnp.sum(e, axis=-1, keepdims=True), approx=True)
        oh = jnp.dot(pa.astype(bf16), vh, preferred_element_type=f32)  # [S, Dh]
        # concat(o_h) @ Wo  ==  sum_h  o_h @ Wo[h*Dh:(h+1)*Dh, :]
        part = jnp.dot(oh.astype(bf16), wo[lo:lo + Dh, :],
                       preferred_element_type=f32)                     # [S, D]
        attn = part if attn is None else attn + part
    attn = attn + bo

    # ---- residual + LayerNorm 1 (dropout = identity at inference) ----
    x1 = attn + x_q
    mu1 = jnp.mean(x1, axis=-1, keepdims=True)
    xc1 = x1 - mu1
    var1 = jnp.mean(xc1 * xc1, axis=-1, keepdims=True)
    x1n = xc1 * jax.lax.rsqrt(var1 + eps) * g1 + be1

    # ---- feed-forward: Linear -> ReLU -> Linear ----
    hdn = jnp.dot(x1n.astype(bf16), w_ff1_ref[...], preferred_element_type=f32)
    hdn = jnp.maximum(hdn + b_ff1_ref[...], 0.0)          # [S, F] lane-dense
    ff = jnp.dot(hdn.astype(bf16), w_ff2_ref[...], preferred_element_type=f32) + b_ff2

    # ---- residual + LayerNorm 2 (dropout = identity at inference) ----
    x2 = ff + x1n
    mu2 = jnp.mean(x2, axis=-1, keepdims=True)
    xc2 = x2 - mu2
    var2 = jnp.mean(xc2 * xc2, axis=-1, keepdims=True)
    o_ref[0] = xc2 * jax.lax.rsqrt(var2 + eps) * g2 + be2


def transformer_block_forward(value, key, query, params, *, n_heads, eps=1e-5):
    """Fused TransformerBlock forward. value/key/query: [B, S, D] f32."""
    w_attn, w_ff1, w_ff2, prm, b_ff1 = params
    B, S, D = query.shape
    F = w_ff1.shape[1]

    kernel = functools.partial(_transformer_block_kernel,
                               d_model=D, n_heads=n_heads, eps=eps)

    seq_spec = pl.BlockSpec((1, S, D), lambda b: (b, 0, 0))
    resident = lambda shape: pl.BlockSpec(shape, lambda b: (0, 0))

    out = pl.pallas_call(
        kernel,
        grid=(B,),
        in_specs=[
            seq_spec,                       # value
            seq_spec,                       # key
            seq_spec,                       # query
            resident((D, 4 * D)),           # fused Wq|Wk|Wv|Wo (bf16)
            resident((D, F)),               # FFN weight 1 (bf16)
            resident((F, D)),               # FFN weight 2 (bf16)
            resident((prm.shape[0], D)),    # fused biases + LayerNorm params
            resident((1, F)),               # FFN bias 1
        ],
        out_specs=seq_spec,
        out_shape=jax.ShapeDtypeStruct((B, S, D), jnp.float32),
        compiler_params=pltpu.CompilerParams(
            dimension_semantics=("parallel",),      # batch-parallel (v7x 2 TCs)
            vmem_limit_bytes=32 * 1024 * 1024),
    )(value, key, query, w_attn, w_ff1, w_ff2, prm, b_ff1)
    return out


def make_params(rng, d_model, forward_scale):
    """Deterministic params. Weights bf16 (MXU operands), per-channel f32."""
    F = forward_scale * d_model
    ks = jax.random.split(rng, 6)

    def linear_w(k, fan_in, fan_out):
        lim = 1.0 / math.sqrt(fan_in)
        return jax.random.uniform(k, (fan_in, fan_out), jnp.float32, -lim, lim)

    wq = linear_w(ks[0], d_model, d_model)
    wk = linear_w(ks[1], d_model, d_model)
    wv = linear_w(ks[2], d_model, d_model)
    wo = linear_w(ks[3], d_model, d_model)
    w_attn = jnp.concatenate([wq, wk, wv, wo], axis=1).astype(jnp.bfloat16)  # [D, 4D]

    w_ff1 = linear_w(ks[4], d_model, F).astype(jnp.bfloat16)                 # [D, F]
    w_ff2 = linear_w(ks[5], F, d_model).astype(jnp.bfloat16)                 # [F, D]

    zeros = jnp.zeros((1, d_model), jnp.float32)
    ones = jnp.ones((1, d_model), jnp.float32)
    # rows: bq, bk, bv, bo, ln1_gamma, ln1_beta, ln2_gamma, ln2_beta, b_ff2
    prm = jnp.concatenate([zeros, zeros, zeros, zeros,
                           ones, zeros, ones, zeros, zeros], axis=0)         # [9, D]
    b_ff1 = jnp.zeros((1, F), jnp.float32)
    return (w_attn, w_ff1, w_ff2, prm, b_ff1)


if __name__ == "__main__":
    B, S, D, H, FS = 2, 8, 32, 4, 4       # batch, seq, d_model, heads, forward_scale

    rng = jax.random.PRNGKey(0)
    kv, kk, kq, kp = jax.random.split(rng, 4)
    value = jax.random.normal(kv, (B, S, D), dtype=jnp.float32)
    key_t = jax.random.normal(kk, (B, S, D), dtype=jnp.float32)
    query = jax.random.normal(kq, (B, S, D), dtype=jnp.float32)
    params = make_params(kp, D, FS)

    out = transformer_block_forward(value, key_t, query, params, n_heads=H)
    out = jax.block_until_ready(out)

    # Sanity: shape, finiteness, and LayerNorm (gamma=1, beta=0) statistics —
    # every output row should be ~zero-mean, ~unit-std over d_model.
    assert out.shape == (B, S, D)
    assert bool(jnp.all(jnp.isfinite(out)))
    row_mean = jnp.mean(out, axis=-1)
    row_std = jnp.std(out, axis=-1)
    assert bool(jnp.all(jnp.abs(row_mean) < 1e-3))
    assert bool(jnp.all(jnp.abs(row_std - 1.0) < 5e-2))

    print("KERNEL_OK")
</pallas_src>

<mosaic_0001>
module attributes {stable_mosaic.version = 11 : i64} {
  func.func @_transformer_block_kernel(%arg0: i32, %arg1: memref<1x8x32xf32, #tpu.memory_space<vmem>>, %arg2: memref<1x8x32xf32, #tpu.memory_space<vmem>>, %arg3: memref<1x8x32xf32, #tpu.memory_space<vmem>>, %arg4: memref<32x128xbf16, #tpu.memory_space<vmem>>, %arg5: memref<32x128xbf16, #tpu.memory_space<vmem>>, %arg6: memref<128x32xbf16, #tpu.memory_space<vmem>>, %arg7: memref<9x32xf32, #tpu.memory_space<vmem>>, %arg8: memref<1x128xf32, #tpu.memory_space<vmem>>, %arg9: memref<1x8x32xf32, #tpu.memory_space<vmem>>) attributes {dimension_semantics = [#tpu.dimension_semantics<parallel>], iteration_bounds = array<i64: 2>, scalar_prefetch = 0 : i64, scratch_operands = 0 : i64, tpu.core_type = #tpu.core_type<tc>, window_params = [{transform_indices = @transform_0, window_bounds = array<i64: 1, 8, 32>}, {transform_indices = @transform_1, window_bounds = array<i64: 1, 8, 32>}, {transform_indices = @transform_2, window_bounds = array<i64: 1, 8, 32>}, {pipeline_mode = #tpu.pipeline_mode<synchronous>, transform_indices = @transform_3, window_bounds = array<i64: 32, 128>}, {pipeline_mode = #tpu.pipeline_mode<synchronous>, transform_indices = @transform_4, window_bounds = array<i64: 32, 128>}, {pipeline_mode = #tpu.pipeline_mode<synchronous>, transform_indices = @transform_5, window_bounds = array<i64: 128, 32>}, {pipeline_mode = #tpu.pipeline_mode<synchronous>, transform_indices = @transform_6, window_bounds = array<i64: 9, 32>}, {pipeline_mode = #tpu.pipeline_mode<synchronous>, transform_indices = @transform_7, window_bounds = array<i64: 1, 128>}, {transform_indices = @transform_8, window_bounds = array<i64: 1, 8, 32>}]} {
    %c0 = arith.constant 0 : index
    %c0_0 = arith.constant 0 : index
    %c0_1 = arith.constant 0 : index
    %0 = vector.load %arg1[%c0, %c0_0, %c0_1] : memref<1x8x32xf32, #tpu.memory_space<vmem>>, vector<1x8x32xf32>
    %1 = vector.shape_cast %0 : vector<1x8x32xf32> to vector<8x32xf32>
    %c0_2 = arith.constant 0 : index
    %c0_3 = arith.constant 0 : index
    %c0_4 = arith.constant 0 : index
    %2 = vector.load %arg2[%c0_2, %c0_3, %c0_4] : memref<1x8x32xf32, #tpu.memory_space<vmem>>, vector<1x8x32xf32>
    %3 = vector.shape_cast %2 : vector<1x8x32xf32> to vector<8x32xf32>
    %c0_5 = arith.constant 0 : index
    %c0_6 = arith.constant 0 : index
    %c0_7 = arith.constant 0 : index
    %4 = vector.load %arg3[%c0_5, %c0_6, %c0_7] : memref<1x8x32xf32, #tpu.memory_space<vmem>>, vector<1x8x32xf32>
    %5 = vector.shape_cast %4 : vector<1x8x32xf32> to vector<8x32xf32>
    %c0_8 = arith.constant 0 : index
    %c0_9 = arith.constant 0 : index
    %6 = vector.load %arg4[%c0_8, %c0_9] : memref<32x128xbf16, #tpu.memory_space<vmem>>, vector<32x128xbf16>
    %7 = vector.extract_strided_slice %6 {offsets = [0, 0], sizes = [32, 32], strides = [1, 1]} : vector<32x128xbf16> to vector<32x32xbf16>
    %8 = vector.extract_strided_slice %6 {offsets = [0, 32], sizes = [32, 32], strides = [1, 1]} : vector<32x128xbf16> to vector<32x32xbf16>
    %9 = vector.extract_strided_slice %6 {offsets = [0, 64], sizes = [32, 32], strides = [1, 1]} : vector<32x128xbf16> to vector<32x32xbf16>
    %10 = vector.extract_strided_slice %6 {offsets = [0, 96], sizes = [32, 32], strides = [1, 1]} : vector<32x128xbf16> to vector<32x32xbf16>
    %c0_10 = arith.constant 0 : index
    %c0_11 = arith.constant 0 : index
    %11 = vector.load %arg7[%c0_10, %c0_11] : memref<9x32xf32, #tpu.memory_space<vmem>>, vector<9x32xf32>
    %12 = vector.extract_strided_slice %11 {offsets = [0, 0], sizes = [1, 32], strides = [1, 1]} : vector<9x32xf32> to vector<1x32xf32>
    %13 = vector.extract_strided_slice %11 {offsets = [1, 0], sizes = [1, 32], strides = [1, 1]} : vector<9x32xf32> to vector<1x32xf32>
    %14 = vector.extract_strided_slice %11 {offsets = [2, 0], sizes = [1, 32], strides = [1, 1]} : vector<9x32xf32> to vector<1x32xf32>
    %15 = vector.extract_strided_slice %11 {offsets = [3, 0], sizes = [1, 32], strides = [1, 1]} : vector<9x32xf32> to vector<1x32xf32>
    %16 = vector.extract_strided_slice %11 {offsets = [4, 0], sizes = [1, 32], strides = [1, 1]} : vector<9x32xf32> to vector<1x32xf32>
    %17 = vector.extract_strided_slice %11 {offsets = [5, 0], sizes = [1, 32], strides = [1, 1]} : vector<9x32xf32> to vector<1x32xf32>
    %18 = vector.extract_strided_slice %11 {offsets = [6, 0], sizes = [1, 32], strides = [1, 1]} : vector<9x32xf32> to vector<1x32xf32>
    %19 = vector.extract_strided_slice %11 {offsets = [7, 0], sizes = [1, 32], strides = [1, 1]} : vector<9x32xf32> to vector<1x32xf32>
    %20 = vector.extract_strided_slice %11 {offsets = [8, 0], sizes = [1, 32], strides = [1, 1]} : vector<9x32xf32> to vector<1x32xf32>
    %21 = arith.truncf %5 : vector<8x32xf32> to vector<8x32xbf16>
    %cst = arith.constant dense<0.000000e+00> : vector<8x32xf32>
    %22 = tpu.matmul %21, %7, %cst {dimension_numbers = #tpu.dot_dimension_numbers<[1], [0], [0], [1], [0, 0, 1, 1], [], []>} : vector<8x32xbf16>, vector<32x32xbf16>, vector<8x32xf32> -> vector<8x32xf32>
    %23 = vector.broadcast %12 : vector<1x32xf32> to vector<8x32xf32>
    %24 = arith.addf %22, %23 : vector<8x32xf32>
    %25 = arith.truncf %3 : vector<8x32xf32> to vector<8x32xbf16>
    %cst_12 = arith.constant dense<0.000000e+00> : vector<8x32xf32>
    %26 = tpu.matmul %25, %8, %cst_12 {dimension_numbers = #tpu.dot_dimension_numbers<[1], [0], [0], [1], [0, 0, 1, 1], [], []>} : vector<8x32xbf16>, vector<32x32xbf16>, vector<8x32xf32> -> vector<8x32xf32>
    %27 = vector.broadcast %13 : vector<1x32xf32> to vector<8x32xf32>
    %28 = arith.addf %26, %27 : vector<8x32xf32>
    %29 = arith.truncf %1 : vector<8x32xf32> to vector<8x32xbf16>
    %cst_13 = arith.constant dense<0.000000e+00> : vector<8x32xf32>
    %30 = tpu.matmul %29, %9, %cst_13 {dimension_numbers = #tpu.dot_dimension_numbers<[1], [0], [0], [1], [0, 0, 1, 1], [], []>} : vector<8x32xbf16>, vector<32x32xbf16>, vector<8x32xf32> -> vector<8x32xf32>
    %31 = vector.broadcast %14 : vector<1x32xf32> to vector<8x32xf32>
    %32 = arith.addf %30, %31 : vector<8x32xf32>
    %33 = vector.extract_strided_slice %24 {offsets = [0, 0], sizes = [8, 8], strides = [1, 1]} : vector<8x32xf32> to vector<8x8xf32>
    %34 = arith.truncf %33 : vector<8x8xf32> to vector<8x8xbf16>
    %35 = vector.extract_strided_slice %28 {offsets = [0, 0], sizes = [8, 8], strides = [1, 1]} : vector<8x32xf32> to vector<8x8xf32>
    %36 = arith.truncf %35 : vector<8x8xf32> to vector<8x8xbf16>
    %37 = vector.extract_strided_slice %32 {offsets = [0, 0], sizes = [8, 8], strides = [1, 1]} : vector<8x32xf32> to vector<8x8xf32>
    %38 = arith.truncf %37 : vector<8x8xf32> to vector<8x8xbf16>
    %cst_14 = arith.constant dense<0.000000e+00> : vector<8x8xf32>
    %39 = tpu.matmul %34, %36, %cst_14 {dimension_numbers = #tpu.dot_dimension_numbers<[1], [1], [0], [0], [0, 0, 1, 0], [], []>} : vector<8x8xbf16>, vector<8x8xbf16>, vector<8x8xf32> -> vector<8x8xf32>
    %cst_15 = arith.constant 0.353553385 : f32
    %40 = vector.broadcast %cst_15 : f32 to vector<8x8xf32>
    %41 = arith.mulf %39, %40 : vector<8x8xf32>
    %cst_16 = arith.constant dense<0xFF800000> : vector<8xf32>
    %42 = vector.multi_reduction <maximumf>, %41, %cst_16 [1] : vector<8x8xf32> to vector<8xf32>
    %43 = vector.shape_cast %42 : vector<8xf32> to vector<8x1xf32>
    %44 = vector.broadcast %43 : vector<8x1xf32> to vector<8x8xf32>
    %45 = arith.subf %41, %44 : vector<8x8xf32>
    %46 = math.exp %45 : vector<8x8xf32>
    %cst_17 = arith.constant dense<0.000000e+00> : vector<8xf32>
    %47 = vector.multi_reduction <add>, %46, %cst_17 [1] : vector<8x8xf32> to vector<8xf32>
    %48 = vector.shape_cast %47 : vector<8xf32> to vector<8x1xf32>
    %49 = tpu.reciprocal %48 {approx = true} : vector<8x1xf32> -> vector<8x1xf32>
    %50 = vector.broadcast %49 : vector<8x1xf32> to vector<8x8xf32>
    %51 = arith.mulf %46, %50 : vector<8x8xf32>
    %52 = arith.truncf %51 : vector<8x8xf32> to vector<8x8xbf16>
    %cst_18 = arith.constant dense<0.000000e+00> : vector<8x8xf32>
    %53 = tpu.matmul %52, %38, %cst_18 {dimension_numbers = #tpu.dot_dimension_numbers<[1], [0], [0], [1], [0, 0, 1, 1], [], []>} : vector<8x8xbf16>, vector<8x8xbf16>, vector<8x8xf32> -> vector<8x8xf32>
    %54 = arith.truncf %53 : vector<8x8xf32> to vector<8x8xbf16>
    %55 = vector.extract_strided_slice %10 {offsets = [0, 0], sizes = [8, 32], strides = [1, 1]} : vector<32x32xbf16> to vector<8x32xbf16>
    %cst_19 = arith.constant dense<0.000000e+00> : vector<8x32xf32>
    %56 = tpu.matmul %54, %55, %cst_19 {dimension_numbers = #tpu.dot_dimension_numbers<[1], [0], [0], [1], [0, 0, 1, 1], [], []>} : vector<8x8xbf16>, vector<8x32xbf16>, vector<8x32xf32> -> vector<8x32xf32>
    %57 = vector.extract_strided_slice %24 {offsets = [0, 8], sizes = [8, 8], strides = [1, 1]} : vector<8x32xf32> to vector<8x8xf32>
    %58 = arith.truncf %57 : vector<8x8xf32> to vector<8x8xbf16>
    %59 = vector.extract_strided_slice %28 {offsets = [0, 8], sizes = [8, 8], strides = [1, 1]} : vector<8x32xf32> to vector<8x8xf32>
    %60 = arith.truncf %59 : vector<8x8xf32> to vector<8x8xbf16>
    %61 = vector.extract_strided_slice %32 {offsets = [0, 8], sizes = [8, 8], strides = [1, 1]} : vector<8x32xf32> to vector<8x8xf32>
    %62 = arith.truncf %61 : vector<8x8xf32> to vector<8x8xbf16>
    %cst_20 = arith.constant dense<0.000000e+00> : vector<8x8xf32>
    %63 = tpu.matmul %58, %60, %cst_20 {dimension_numbers = #tpu.dot_dimension_numbers<[1], [1], [0], [0], [0, 0, 1, 0], [], []>} : vector<8x8xbf16>, vector<8x8xbf16>, vector<8x8xf32> -> vector<8x8xf32>
    %cst_21 = arith.constant 0.353553385 : f32
    %64 = vector.broadcast %cst_21 : f32 to vector<8x8xf32>
    %65 = arith.mulf %63, %64 : vector<8x8xf32>
    %cst_22 = arith.constant dense<0xFF800000> : vector<8xf32>
    %66 = vector.multi_reduction <maximumf>, %65, %cst_22 [1] : vector<8x8xf32> to vector<8xf32>
    %67 = vector.shape_cast %66 : vector<8xf32> to vector<8x1xf32>
    %68 = vector.broadcast %67 : vector<8x1xf32> to vector<8x8xf32>
    %69 = arith.subf %65, %68 : vector<8x8xf32>
    %70 = math.exp %69 : vector<8x8xf32>
    %cst_23 = arith.constant dense<0.000000e+00> : vector<8xf32>
    %71 = vector.multi_reduction <add>, %70, %cst_23 [1] : vector<8x8xf32> to vector<8xf32>
    %72 = vector.shape_cast %71 : vector<8xf32> to vector<8x1xf32>
    %73 = tpu.reciprocal %72 {approx = true} : vector<8x1xf32> -> vector<8x1xf32>
    %74 = vector.broadcast %73 : vector<8x1xf32> to vector<8x8xf32>
    %75 = arith.mulf %70, %74 : vector<8x8xf32>
    %76 = arith.truncf %75 : vector<8x8xf32> to vector<8x8xbf16>
    %cst_24 = arith.constant dense<0.000000e+00> : vector<8x8xf32>
    %77 = tpu.matmul %76, %62, %cst_24 {dimension_numbers = #tpu.dot_dimension_numbers<[1], [0], [0], [1], [0, 0, 1, 1], [], []>} : vector<8x8xbf16>, vector<8x8xbf16>, vector<8x8xf32> -> vector<8x8xf32>
    %78 = arith.truncf %77 : vector<8x8xf32> to vector<8x8xbf16>
    %79 = vector.extract_strided_slice %10 {offsets = [8, 0], sizes = [8, 32], strides = [1, 1]} : vector<32x32xbf16> to vector<8x32xbf16>
    %cst_25 = arith.constant dense<0.000000e+00> : vector<8x32xf32>
    %80 = tpu.matmul %78, %79, %cst_25 {dimension_numbers = #tpu.dot_dimension_numbers<[1], [0], [0], [1], [0, 0, 1, 1], [], []>} : vector<8x8xbf16>, vector<8x32xbf16>, vector<8x32xf32> -> vector<8x32xf32>
    %81 = arith.addf %56, %80 : vector<8x32xf32>
    %82 = vector.extract_strided_slice %24 {offsets = [0, 16], sizes = [8, 8], strides = [1, 1]} : vector<8x32xf32> to vector<8x8xf32>
    %83 = arith.truncf %82 : vector<8x8xf32> to vector<8x8xbf16>
    %84 = vector.extract_strided_slice %28 {offsets = [0, 16], sizes = [8, 8], strides = [1, 1]} : vector<8x32xf32> to vector<8x8xf32>
    %85 = arith.truncf %84 : vector<8x8xf32> to vector<8x8xbf16>
    %86 = vector.extract_strided_slice %32 {offsets = [0, 16], sizes = [8, 8], strides = [1, 1]} : vector<8x32xf32> to vector<8x8xf32>
    %87 = arith.truncf %86 : vector<8x8xf32> to vector<8x8xbf16>
    %cst_26 = arith.constant dense<0.000000e+00> : vector<8x8xf32>
    %88 = tpu.matmul %83, %85, %cst_26 {dimension_numbers = #tpu.dot_dimension_numbers<[1], [1], [0], [0], [0, 0, 1, 0], [], []>} : vector<8x8xbf16>, vector<8x8xbf16>, vector<8x8xf32> -> vector<8x8xf32>
    %cst_27 = arith.constant 0.353553385 : f32
    %89 = vector.broadcast %cst_27 : f32 to vector<8x8xf32>
    %90 = arith.mulf %88, %89 : vector<8x8xf32>
    %cst_28 = arith.constant dense<0xFF800000> : vector<8xf32>
    %91 = vector.multi_reduction <maximumf>, %90, %cst_28 [1] : vector<8x8xf32> to vector<8xf32>
    %92 = vector.shape_cast %91 : vector<8xf32> to vector<8x1xf32>
    %93 = vector.broadcast %92 : vector<8x1xf32> to vector<8x8xf32>
    %94 = arith.subf %90, %93 : vector<8x8xf32>
    %95 = math.exp %94 : vector<8x8xf32>
    %cst_29 = arith.constant dense<0.000000e+00> : vector<8xf32>
    %96 = vector.multi_reduction <add>, %95, %cst_29 [1] : vector<8x8xf32> to vector<8xf32>
    %97 = vector.shape_cast %96 : vector<8xf32> to vector<8x1xf32>
    %98 = tpu.reciprocal %97 {approx = true} : vector<8x1xf32> -> vector<8x1xf32>
    %99 = vector.broadcast %98 : vector<8x1xf32> to vector<8x8xf32>
    %100 = arith.mulf %95, %99 : vector<8x8xf32>
    %101 = arith.truncf %100 : vector<8x8xf32> to vector<8x8xbf16>
    %cst_30 = arith.constant dense<0.000000e+00> : vector<8x8xf32>
    %102 = tpu.matmul %101, %87, %cst_30 {dimension_numbers = #tpu.dot_dimension_numbers<[1], [0], [0], [1], [0, 0, 1, 1], [], []>} : vector<8x8xbf16>, vector<8x8xbf16>, vector<8x8xf32> -> vector<8x8xf32>
    %103 = arith.truncf %102 : vector<8x8xf32> to vector<8x8xbf16>
    %104 = vector.extract_strided_slice %10 {offsets = [16, 0], sizes = [8, 32], strides = [1, 1]} : vector<32x32xbf16> to vector<8x32xbf16>
    %cst_31 = arith.constant dense<0.000000e+00> : vector<8x32xf32>
    %105 = tpu.matmul %103, %104, %cst_31 {dimension_numbers = #tpu.dot_dimension_numbers<[1], [0], [0], [1], [0, 0, 1, 1], [], []>} : vector<8x8xbf16>, vector<8x32xbf16>, vector<8x32xf32> -> vector<8x32xf32>
    %106 = arith.addf %81, %105 : vector<8x32xf32>
    %107 = vector.extract_strided_slice %24 {offsets = [0, 24], sizes = [8, 8], strides = [1, 1]} : vector<8x32xf32> to vector<8x8xf32>
    %108 = arith.truncf %107 : vector<8x8xf32> to vector<8x8xbf16>
    %109 = vector.extract_strided_slice %28 {offsets = [0, 24], sizes = [8, 8], strides = [1, 1]} : vector<8x32xf32> to vector<8x8xf32>
    %110 = arith.truncf %109 : vector<8x8xf32> to vector<8x8xbf16>
    %111 = vector.extract_strided_slice %32 {offsets = [0, 24], sizes = [8, 8], strides = [1, 1]} : vector<8x32xf32> to vector<8x8xf32>
    %112 = arith.truncf %111 : vector<8x8xf32> to vector<8x8xbf16>
    %cst_32 = arith.constant dense<0.000000e+00> : vector<8x8xf32>
    %113 = tpu.matmul %108, %110, %cst_32 {dimension_numbers = #tpu.dot_dimension_numbers<[1], [1], [0], [0], [0, 0, 1, 0], [], []>} : vector<8x8xbf16>, vector<8x8xbf16>, vector<8x8xf32> -> vector<8x8xf32>
    %cst_33 = arith.constant 0.353553385 : f32
    %114 = vector.broadcast %cst_33 : f32 to vector<8x8xf32>
    %115 = arith.mulf %113, %114 : vector<8x8xf32>
    %cst_34 = arith.constant dense<0xFF800000> : vector<8xf32>
    %116 = vector.multi_reduction <maximumf>, %115, %cst_34 [1] : vector<8x8xf32> to vector<8xf32>
    %117 = vector.shape_cast %116 : vector<8xf32> to vector<8x1xf32>
    %118 = vector.broadcast %117 : vector<8x1xf32> to vector<8x8xf32>
    %119 = arith.subf %115, %118 : vector<8x8xf32>
    %120 = math.exp %119 : vector<8x8xf32>
    %cst_35 = arith.constant dense<0.000000e+00> : vector<8xf32>
    %121 = vector.multi_reduction <add>, %120, %cst_35 [1] : vector<8x8xf32> to vector<8xf32>
    %122 = vector.shape_cast %121 : vector<8xf32> to vector<8x1xf32>
    %123 = tpu.reciprocal %122 {approx = true} : vector<8x1xf32> -> vector<8x1xf32>
    %124 = vector.broadcast %123 : vector<8x1xf32> to vector<8x8xf32>
    %125 = arith.mulf %120, %124 : vector<8x8xf32>
    %126 = arith.truncf %125 : vector<8x8xf32> to vector<8x8xbf16>
    %cst_36 = arith.constant dense<0.000000e+00> : vector<8x8xf32>
    %127 = tpu.matmul %126, %112, %cst_36 {dimension_numbers = #tpu.dot_dimension_numbers<[1], [0], [0], [1], [0, 0, 1, 1], [], []>} : vector<8x8xbf16>, vector<8x8xbf16>, vector<8x8xf32> -> vector<8x8xf32>
    %128 = arith.truncf %127 : vector<8x8xf32> to vector<8x8xbf16>
    %129 = vector.extract_strided_slice %10 {offsets = [24, 0], sizes = [8, 32], strides = [1, 1]} : vector<32x32xbf16> to vector<8x32xbf16>
    %cst_37 = arith.constant dense<0.000000e+00> : vector<8x32xf32>
    %130 = tpu.matmul %128, %129, %cst_37 {dimension_numbers = #tpu.dot_dimension_numbers<[1], [0], [0], [1], [0, 0, 1, 1], [], []>} : vector<8x8xbf16>, vector<8x32xbf16>, vector<8x32xf32> -> vector<8x32xf32>
    %131 = arith.addf %106, %130 : vector<8x32xf32>
    %132 = vector.broadcast %15 : vector<1x32xf32> to vector<8x32xf32>
    %133 = arith.addf %131, %132 : vector<8x32xf32>
    %134 = arith.addf %133, %5 : vector<8x32xf32>
    %cst_38 = arith.constant dense<0.000000e+00> : vector<8xf32>
    %135 = vector.multi_reduction <add>, %134, %cst_38 [1] : vector<8x32xf32> to vector<8xf32>
    %136 = vector.shape_cast %135 : vector<8xf32> to vector<8x1xf32>
    %cst_39 = arith.constant 3.200000e+01 : f32
    %137 = vector.broadcast %cst_39 : f32 to vector<8x1xf32>
    %138 = arith.divf %136, %137 : vector<8x1xf32>
    %139 = vector.broadcast %138 : vector<8x1xf32> to vector<8x32xf32>
    %140 = arith.subf %134, %139 : vector<8x32xf32>
    %141 = arith.mulf %140, %140 : vector<8x32xf32>
    %cst_40 = arith.constant dense<0.000000e+00> : vector<8xf32>
    %142 = vector.multi_reduction <add>, %141, %cst_40 [1] : vector<8x32xf32> to vector<8xf32>
    %143 = vector.shape_cast %142 : vector<8xf32> to vector<8x1xf32>
    %cst_41 = arith.constant 3.200000e+01 : f32
    %144 = vector.broadcast %cst_41 : f32 to vector<8x1xf32>
    %145 = arith.divf %143, %144 : vector<8x1xf32>
    %cst_42 = arith.constant 9.99999974E-6 : f32
    %146 = vector.broadcast %cst_42 : f32 to vector<8x1xf32>
    %147 = arith.addf %145, %146 : vector<8x1xf32>
    %148 = math.rsqrt %147 : vector<8x1xf32>
    %149 = vector.broadcast %148 : vector<8x1xf32> to vector<8x32xf32>
    %150 = arith.mulf %140, %149 : vector<8x32xf32>
    %151 = vector.broadcast %16 : vector<1x32xf32> to vector<8x32xf32>
    %152 = arith.mulf %150, %151 : vector<8x32xf32>
    %153 = vector.broadcast %17 : vector<1x32xf32> to vector<8x32xf32>
    %154 = arith.addf %152, %153 : vector<8x32xf32>
    %155 = arith.truncf %154 : vector<8x32xf32> to vector<8x32xbf16>
    %c0_43 = arith.constant 0 : index
    %c0_44 = arith.constant 0 : index
    %156 = vector.load %arg5[%c0_43, %c0_44] : memref<32x128xbf16, #tpu.memory_space<vmem>>, vector<32x128xbf16>
    %cst_45 = arith.constant dense<0.000000e+00> : vector<8x128xf32>
    %157 = tpu.matmul %155, %156, %cst_45 {dimension_numbers = #tpu.dot_dimension_numbers<[1], [0], [0], [1], [0, 0, 1, 1], [], []>} : vector<8x32xbf16>, vector<32x128xbf16>, vector<8x128xf32> -> vector<8x128xf32>
    %c0_46 = arith.constant 0 : index
    %c0_47 = arith.constant 0 : index
    %158 = vector.load %arg8[%c0_46, %c0_47] : memref<1x128xf32, #tpu.memory_space<vmem>>, vector<1x128xf32>
    %159 = vector.broadcast %158 : vector<1x128xf32> to vector<8x128xf32>
    %160 = arith.addf %157, %159 : vector<8x128xf32>
    %cst_48 = arith.constant 0.000000e+00 : f32
    %161 = vector.broadcast %cst_48 : f32 to vector<8x128xf32>
    %162 = arith.maximumf %160, %161 : vector<8x128xf32>
    %163 = arith.truncf %162 : vector<8x128xf32> to vector<8x128xbf16>
    %c0_49 = arith.constant 0 : index
    %c0_50 = arith.constant 0 : index
    %164 = vector.load %arg6[%c0_49, %c0_50] : memref<128x32xbf16, #tpu.memory_space<vmem>>, vector<128x32xbf16>
    %cst_51 = arith.constant dense<0.000000e+00> : vector<8x32xf32>
    %165 = tpu.matmul %163, %164, %cst_51 {dimension_numbers = #tpu.dot_dimension_numbers<[1], [0], [0], [1], [0, 0, 1, 1], [], []>} : vector<8x128xbf16>, vector<128x32xbf16>, vector<8x32xf32> -> vector<8x32xf32>
    %166 = vector.broadcast %20 : vector<1x32xf32> to vector<8x32xf32>
    %167 = arith.addf %165, %166 : vector<8x32xf32>
    %168 = arith.addf %167, %154 : vector<8x32xf32>
    %cst_52 = arith.constant dense<0.000000e+00> : vector<8xf32>
    %169 = vector.multi_reduction <add>, %168, %cst_52 [1] : vector<8x32xf32> to vector<8xf32>
    %170 = vector.shape_cast %169 : vector<8xf32> to vector<8x1xf32>
    %cst_53 = arith.constant 3.200000e+01 : f32
    %171 = vector.broadcast %cst_53 : f32 to vector<8x1xf32>
    %172 = arith.divf %170, %171 : vector<8x1xf32>
    %173 = vector.broadcast %172 : vector<8x1xf32> to vector<8x32xf32>
    %174 = arith.subf %168, %173 : vector<8x32xf32>
    %175 = arith.mulf %174, %174 : vector<8x32xf32>
    %cst_54 = arith.constant dense<0.000000e+00> : vector<8xf32>
    %176 = vector.multi_reduction <add>, %175, %cst_54 [1] : vector<8x32xf32> to vector<8xf32>
    %177 = vector.shape_cast %176 : vector<8xf32> to vector<8x1xf32>
    %cst_55 = arith.constant 3.200000e+01 : f32
    %178 = vector.broadcast %cst_55 : f32 to vector<8x1xf32>
    %179 = arith.divf %177, %178 : vector<8x1xf32>
    %cst_56 = arith.constant 9.99999974E-6 : f32
    %180 = vector.broadcast %cst_56 : f32 to vector<8x1xf32>
    %181 = arith.addf %179, %180 : vector<8x1xf32>
    %182 = math.rsqrt %181 : vector<8x1xf32>
    %183 = vector.broadcast %182 : vector<8x1xf32> to vector<8x32xf32>
    %184 = arith.mulf %174, %183 : vector<8x32xf32>
    %185 = vector.broadcast %18 : vector<1x32xf32> to vector<8x32xf32>
    %186 = arith.mulf %184, %185 : vector<8x32xf32>
    %187 = vector.broadcast %19 : vector<1x32xf32> to vector<8x32xf32>
    %188 = arith.addf %186, %187 : vector<8x32xf32>
    %c0_57 = arith.constant 0 : index
    %c0_58 = arith.constant 0 : index
    %c0_59 = arith.constant 0 : index
    %189 = vector.load %arg9[%c0_57, %c0_58, %c0_59] : memref<1x8x32xf32, #tpu.memory_space<vmem>>, vector<1x8x32xf32>
    %190 = vector.shape_cast %189 : vector<1x8x32xf32> to vector<8x32xf32>
    %191 = vector.shape_cast %188 : vector<8x32xf32> to vector<1x8x32xf32>
    tpu.vector_store %arg9[%c0_57, %c0_58, %c0_59], %191 {strides = array<i32>} : memref<1x8x32xf32, #tpu.memory_space<vmem>>, vector<1x8x32xf32>,
    return
  }
  func.func @transform_0(%arg0: i32) -> (i32, i32, i32) {
    %c0_i32 = arith.constant 0 : i32
    %c0_i32_0 = arith.constant 0 : i32
    %c0_i32_1 = arith.constant 0 : i32
    return %arg0, %c0_i32, %c0_i32_0 : i32, i32, i32
  }
  func.func @transform_1(%arg0: i32) -> (i32, i32, i32) {
    %c0_i32 = arith.constant 0 : i32
    %c0_i32_0 = arith.constant 0 : i32
    %c0_i32_1 = arith.constant 0 : i32
    return %arg0, %c0_i32, %c0_i32_0 : i32, i32, i32
  }
  func.func @transform_2(%arg0: i32) -> (i32, i32, i32) {
    %c0_i32 = arith.constant 0 : i32
    %c0_i32_0 = arith.constant 0 : i32
    %c0_i32_1 = arith.constant 0 : i32
    return %arg0, %c0_i32, %c0_i32_0 : i32, i32, i32
  }
  func.func @transform_3(%arg0: i32) -> (i32, i32) {
    %c0_i32 = arith.constant 0 : i32
    %c0_i32_0 = arith.constant 0 : i32
    %c0_i32_1 = arith.constant 0 : i32
    return %c0_i32, %c0_i32_0 : i32, i32
  }
  func.func @transform_4(%arg0: i32) -> (i32, i32) {
    %c0_i32 = arith.constant 0 : i32
    %c0_i32_0 = arith.constant 0 : i32
    %c0_i32_1 = arith.constant 0 : i32
    return %c0_i32, %c0_i32_0 : i32, i32
  }
  func.func @transform_5(%arg0: i32) -> (i32, i32) {
    %c0_i32 = arith.constant 0 : i32
    %c0_i32_0 = arith.constant 0 : i32
    %c0_i32_1 = arith.constant 0 : i32
    return %c0_i32, %c0_i32_0 : i32, i32
  }
  func.func @transform_6(%arg0: i32) -> (i32, i32) {
    %c0_i32 = arith.constant 0 : i32
    %c0_i32_0 = arith.constant 0 : i32
    %c0_i32_1 = arith.constant 0 : i32
    return %c0_i32, %c0_i32_0 : i32, i32
  }
  func.func @transform_7(%arg0: i32) -> (i32, i32) {
    %c0_i32 = arith.constant 0 : i32
    %c0_i32_0 = arith.constant 0 : i32
    %c0_i32_1 = arith.constant 0 : i32
    return %c0_i32, %c0_i32_0 : i32, i32
  }
  func.func @transform_8(%arg0: i32) -> (i32, i32, i32) {
    %c0_i32 = arith.constant 0 : i32
    %c0_i32_0 = arith.constant 0 : i32
    %c0_i32_1 = arith.constant 0 : i32
    return %arg0, %c0_i32, %c0_i32_0 : i32, i32, i32
  }
}

</mosaic_0001>

<bundles_post_ra>
// kernel: tpu_custom_call.1
= control target key start
LH: loop header
LB: loop body
LE: loop exit
PB: predicated region body
PF: predicated region fallthrough
CT: control target
= control target key end

     0   :  { %13 = vsyncpa [#allocation3], 0  ;;  %s2354_s0 = inlined_call_operand.vmem [shape: f32[2,8,32], index: 0, kind: input, shape index: {}]   ;;  %s2355_s1 = inlined_call_operand.vmem [shape: f32[2,8,32], index: 1, kind: input, shape index: {}]   ;;  %s2356_s2 = inlined_call_operand.vmem [shape: f32[2,8,32], index: 2, kind: input, shape index: {}]   ;;  %s2357_s3 = inlined_call_operand.vmem [shape: bf16[32,128], index: 3, kind: input, shape index: {}]   ;;  %s2358_s4 = inlined_call_operand.vmem [shape: bf16[32,128], index: 4, kind: input, shape index: {}]   ;;  %s2359_s5 = inlined_call_operand.vmem [shape: bf16[128,32], index: 5, kind: input, shape index: {}]   ;;  %s2360_s6 = inlined_call_operand.hbm [shape: f32[9,32], index: 6, kind: input, shape index: {}]   ;;  %s2361_s7 = inlined_call_operand.vmem [shape: f32[1,128], index: 7, kind: input, shape index: {}]   ;;  %s2362_s8 = inlined_call_operand.hbm [shape: f32[2,8,32], index: 8, kind: output, shape index: {}]  }
   0x1   :  { %14 = vsyncpa [#allocation4], 0 }
   0x2   :  { %16 = vsyncpa [#allocation4 + $0x1], 0  ;;  %s1984_s27 = smov 0   ;;  %s1986_s28 = smov 0  }
   0x3   :  { %s1988_s29 = smov 0   ;;  %s1990_s30 = smov 0  }
   0x4 LB: > { %s2005_s9 = sadd.s32 4294967295, %s1925_s30   ;;  %s1518_s10 = sadd.s32 4294967294, %s1925_s30   ;;  %s1925_s30 = sphi %s1990_s30, %s2378_s30   ;;  %s1921_s29 = sphi %s1988_s29, %s2377_s29   ;;  %s1917_s28 = sphi %s1986_s28, %s2376_s28   ;;  %s1913_s27 = sphi %s1984_s27, %s2375_s27  }
   0x5   : > { %s2009_s11 = sadd.s32 1, %s1925_s30   ;;  %s212_s12 = sadd.s32 1, %s1921_s29 }
   0x6   : > { %s209_s13 = ssub.s32 %s1925_s30, %s2009_s11  ;;  %p222_p0 = scmp.ne.s32.totalorder %s1921_s29, %s1917_s28 }
   0x7   : > { %p210_p1 = scmp.eq.s32.totalorder %s209_s13, 0  ;;  %p223_p2 = scmp.eq.s32.totalorder %s2005_s9, 1 }
   0x8   : > { %p228_p3 = scmp.ne.s32.totalorder %s1917_s28, %s1913_s27  ;;  %p229_p4 = scmp.eq.s32.totalorder %s1518_s10, 1 }
   0x9   : > { %s2020_s14 = scalar_select %p210_p1, %s1921_s29, %s212_s12  }
   0xa   : > { %p2022_p5 = por %p223_p2, %p222_p0  ;;  %p2026_p6 = por %p229_p4, %p228_p3 }
   0xb   : > { %p1519_p7 = scmp.ge.s32.totalorder %s1925_s30, 1  ;;  %p236_p8 = scmp.lt.s32.totalorder %s1925_s30, 3 }
   0xc   : > { %s2366_s15 = scalar_select %p2022_p5, 1, 0 }
   0xd   : > { %s2367_s16 = scalar_select %p2026_p6, 1, 0 }
   0xe   : > { %p2363_p9 = scmp.eq.s32.totalorder %s2005_s9, 0  ;;  %p2033_p10 = pnand %p1519_p7, %p236_p8 }
   0xf   : > { %s1927_s18 = smov [#allocation2]   ;;  %s1831_s23 = scalar_lea.hbm %s2360_s6, 256 }
  0x10   : > { %s2368_s17 = scalar_select %p2033_p10, 1, 0 }
  0x11   : > { %s257_s19 = sshll.u32 %s1927_s18, 4  ;;  %p1741_p11 = pneg %p2033_p10  ;;  %s258_s19 = int_to_ptr.vmem [resolvable:$true] %s257_s19 }
  0x12   : > { %p1832_p13 = scmp.ne.s32.totalorder %s2360_s6, %s1831_s23  ;;  %p1838_p3 = scmp.lt.u32.totalorder %s1831_s23, %s2360_s6 }
  0x13   : > { %p2041_p12 = pnand %p2363_p9, %p1741_p11 }
  0x15   : > { %p1833_p0 = pneg %p2041_p12 }
  0x17   : > { %p1834_p1 = pnand %p1833_p0, %p1832_p13 }
  0x19   : > { %p1835_p2 = pneg %p1834_p1 }
  0x1b   : > { %p1840_p4 = pnand %p1838_p3, %p1835_p2 }
  0x1d   : > { %1843 = shalt.err (!%p1840_p4)
}
  0x1e   : > { %s1844_s12 = scalar_lea.vmem %s258_s19, 256  ;;  %p1852_p9 = scmp.lt.s32.totalorder %s258_s19, %s258_s19 }
  0x1f   : > { %p1845_p7 = scmp.ne.s32.totalorder %s258_s19, %s1844_s12  ;;  %p1853_p6 = scmp.lt.s32.totalorder %s1844_s12, %s1844_s12 }
  0x21   : > { %p1847_p8 = pnand %p1845_p7, %p1833_p0  ;;  %p1854_p5 = por %p1853_p6, %p1852_p9 }
  0x23   : > { %p1848_p11 = pneg %p1847_p8 }
  0x25   : > { %p1855_p10 = pnand %p1854_p5, %p1848_p11 }
  0x27   : > { %1858 = shalt.err (!%p1855_p10)
}
  0x28   : > { %s1928_s13 = smov 128   ;;  %s1929_s18 = smov 8  }
  0x29   : > { %1744 = dma.hbm_to_vmem [thread:$0]  (!%p2041_p12), %s2360_s6, 256, %s258_s19, [#allocation3], %s1928_s13, %s1928_s13, %s1929_s18  }
  0x2a   : > { %p2370_p13 = scmp.ne.s32.totalorder %s2368_s17, 0 }
  0x2b   : > { %p2371_p1 = scmp.eq.s32.totalorder (!%p2370_p13), %s2005_s9, 0 }
  0x2c   : > { %297 = sbr.rel (%p2370_p13) target bundleno = 3846 (0xf06), region = 52 }
  0x33   : > { %1904 = dma.done.wait (%p2371_p1), [#allocation3], 256   ;;  %p2372_p0 = pmov %p2371_p1 }
  0x34   : > { %p338_p5 = scmp.lt.s32.totalorder %s2005_s9, 1  ;;  %v1930_v0 = vmov 0.0   ;;  %vm1931_vm0 = vmmov 0   ;;  %v2084_v1 = vld [vmem:[%s2357_s3] sm:$0xf]  ;;  %vm377_vm1 = vcmask 261120   ;;  %v361_v15 = vlaneseq }
  0x35   : > { %1906 = vsyncadd (%p2372_p0), [#allocation3], 4294967040  ;;  %1611 = vmatprep.subr.bf16.mxu1 %v1930_v0  ;;  %1615 = vmatprep.mubr.msk.bf16.mxu1 %vm1931_vm0, %v1930_v0  ;;  %v2089_v2 = vld [vmem:[%s2357_s3 + $0x4] sm:$0xf]  ;;  %v2094_v3 = vld [vmem:[%s2357_s3 + $0x8] sm:$0xf] }
  0x36   : > { %s339_s19 = scalar_select %p338_p5, %s2005_s9, 1  ;;  %1641 = vmatprep.subr.bf16.mxu0 %v1930_v0  ;;  %1643 = vmatprep.mubr.msk.bf16.mxu0 %vm1931_vm0, %v1930_v0  ;;  %v1528_v4 = vcombine.low %v2084_v1, %v2089_v2  ;;  %v2101_v5 = vld [vmem:[%s2357_s3 + $0xc] sm:$0xf]  ;;  %v2129_v16 = vshrl.u32 %v361_v15, 7  ;;  %v2135_v20 = vld [vmem:[#allocation2] sm:$0xff]  ;;  %vm532_vm2 = vcmask 64512  }
  0x37   : > { %v1529_v7 = vcombine.low %v2094_v3, %v2101_v5  ;;  %s1933_s20 = smov 64   ;;  %vm595_vm3 = vcmask 1043456   ;;  %s1935_s13 = smov 112  }
  0x38   : > { %s2075_s17 = sshll.u32 %s339_s19, 3  ;;  %s1932_s19 = smov 96   ;;  %1612 = vmatpush3.bf16.msra.mxu1 %v1528_v4  ;;  %480 = vrot.lane.b32.xlu1 %v1528_v4, %s1933_s20  ;;  %v363_v19 = vsub.s32 0, %v2129_v16  ;;  %v424_v28 = vsub.s32 1, %v2129_v16  ;;  %v478_v37 = vsub.s32 2, %v2129_v16 }
  0x39   : > { %s349_s24 = scalar_lea.vmem %s2356_s2, %s2075_s17  ;;  %426 = vrot.lane.b32.xlu0 %v1528_v4, %s1932_s19  ;;  %1613 = vmatprep.subr.bf16.mxu1 %v1930_v0  ;;  %s345_s25 = scalar_lea.vmem %s2355_s1, %s2075_s17 }
  0x3a   : > { %v2103_v6 = vld [vmem:[%s349_s24] sm:$0xff]  ;;  %s341_s12 = scalar_lea.vmem %s2354_s0, %s2075_s17  ;;  %v364_v21 = vrot.slane %v2135_v20, %v363_v19  ;;  %s1934_s17 = smov 120   ;;  %v425_v29 = vrot.slane %v2135_v20, %v424_v28  ;;  %v479_v39 = vrot.slane %v2135_v20, %v478_v37 }
  0x3b   : > { %v360_v8 = vpack.c.bf16 %v2103_v6, %v2103_v6  ;;  %v352_v10 = vld [vmem:[%s345_s25] sm:$0xff]  ;;  %s1936_s18 = smov 32   ;;  %s1937_s21 = smov 104  }
  0x3c   : > { %1614 = vmatpush3.bf16.msra.mxu1 %v1529_v7  ;;  %482 = vrot.lane.b32.xlu1 %v1529_v7, %s1933_s20  ;;  %v421_v12 = vpack.c.bf16 %v352_v10, %v352_v10  ;;  %v351_v17 = vld [vmem:[%s341_s12] sm:$0xff]  ;;  %p2373_p9 = scmp.ne.s32.totalorder %s2366_s15, 0 }
  0x3d   : > { %428 = vrot.lane.b32.xlu0 %v1529_v7, %s1932_s19  ;;  %1619 = vmatprep.subr.bf16.mxu1 %v1930_v0  ;;  %v475_v18 = vpack.c.bf16 %v351_v17, %v351_v17 }
  0x3f   : > { %1616 = vmatmul.mubr.msk.bf16.vlgmr.msra.gmra.mrb[0].mxu1 %vm377_vm1, %v360_v8 }
  0x40   : > { %1623 = vmatprep.mubr.msk.bf16.mxu1 %vm1931_vm0, %v1930_v0 }
  0xaa   : > { %v481_v13 = vpop.permute.xlu1 %480 }
  0xab   : > { %v427_v9 = vpop.permute.xlu0 %426 }
  0xac   : > { %1620 = vmatpush3.bf16.msra.mxu1 %v427_v9 }
  0xad   : > { %1621 = vmatprep.subr.bf16.mxu1 %v1930_v0 }
  0xae   : > { %v483_v14 = vpop.permute.xlu1 %482 }
  0xaf   : > { %v429_v11 = vpop.permute.xlu0 %428 }
  0xb0   : > { %1622 = vmatpush3.bf16.msra.mxu1 %v429_v11 }
  0xb1   : > { %1627 = vmatprep.subr.bf16.mxu1 %v1930_v0 }
  0xb3   : > { %1624 = vmatmul.mubr.msk.bf16.vlgmr.msra.gmra.mrb[4].mxu1 %vm377_vm1, %v421_v12 }
  0xb4   : > { %1628 = vmatpush3.bf16.msra.mxu1 %v481_v13  ;;  %1631 = vmatprep.mubr.msk.bf16.mxu1 %vm1931_vm0, %v1930_v0 }
  0xb5   : > { %1629 = vmatprep.subr.bf16.mxu1 %v1930_v0 }
  0xb8   : > { %1630 = vmatpush3.bf16.msra.mxu1 %v483_v14  ;;  %v1537_v14 = vcombine.low %v2089_v2, %v2089_v2 }
  0xb9   : > { %1635 = vmatprep.subr.bf16.mxu1 %v1930_v0 }
  0xbb   : > { %1632 = vmatmul.mubr.msk.bf16.vlgmr.msra.gmra.mrb[8].mxu1 %vm377_vm1, %v475_v18 }
  0xbc   : > { %1637 = vmatprep.mubr.msk.bf16.mxu1 %vm1931_vm0, %v1930_v0 }
 0x112   : > { %v415_v22 = vpop.f32.mrb[0].mxu1 }
 0x113   : > { %v416_v23 = vadd.f32 %v415_v22, %v364_v21  ;;  %v1617_v24 = vpop.f32.mrb[1].mxu1 }
 0x114   : > { %v418_v25 = vpop.f32.mrb[2].mxu1 }
 0x115   : > { %v2138_v26 = vpack.c.bf16 %v416_v23, %v416_v23  ;;  %v1618_v27 = vpop.f32.mrb[3].mxu1 }
 0x117   : > { %641 = vrot.lane.b32.xlu1 %v2138_v26, %s1934_s17 }
 0x186   : > { %v469_v30 = vpop.f32.mrb[4].mxu1 }
 0x187   : > { %v470_v31 = vadd.f32 %v469_v30, %v425_v29  ;;  %v1625_v32 = vpop.f32.mrb[5].mxu1 }
 0x188   : > { %v472_v33 = vpop.f32.mrb[6].mxu1 }
 0x189   : > { %v2144_v34 = vpack.c.bf16 %v470_v31, %v470_v31  ;;  %v1626_v35 = vpop.f32.mrb[7].mxu1  ;;  %v642_v48 = vpop.permute.xlu1 %641 }
 0x18b   : > { %644 = vrot.lane.b32.xlu0 %v2144_v34, %s1934_s17  ;;  %v537_v36 = vsel %vm532_vm2, %v2144_v34, 0 }
 0x18c   : > { %1636 = vmatpush3.bf16.xpose.msra.mxu1 %v537_v36 }
 0x18d   : > { %1647 = vmatprep.subr.bf16.mxu1 %v1930_v0 }
 0x18e   : > { %v523_v38 = vpop.f32.mrb[8].mxu1 }
 0x18f   : > { %v1633_v40 = vpop.f32.mrb[9].mxu1  ;;  %v524_v43 = vadd.f32 %v523_v38, %v479_v39 }
 0x190   : > { %v526_v41 = vpop.f32.mrb[10].mxu1 }
 0x191   : > { %v1634_v42 = vpop.f32.mrb[11].mxu1  ;;  %v2157_v44 = vpack.c.bf16 %v524_v43, %v524_v43 }
 0x193   : > { %1638 = vmatmul.mubr.msk.bf16.vlgmr.msra.gmra.mrb[12].mxu1 %vm532_vm2, %v2138_v26  ;;  %v597_v45 = vsel %vm595_vm3, %v2157_v44, 0 }
 0x194   : > { %1649 = vmatprep.mubr.msk.bf16.mxu1 %vm1931_vm0, %v1930_v0  ;;  %1642 = vmatpush3.bf16.msra.mxu0 %v597_v45 }
 0x195   : > { %1653 = vmatprep.subr.bf16.mxu0 %v1930_v0 }
 0x1fd   : > { %v645_v46 = vpop.permute.xlu0 %644 }
 0x1fe   : > { %v650_v47 = vsel %vm532_vm2, %v645_v46, 0 }
 0x1ff   : > { %1648 = vmatpush3.bf16.xpose.msra.mxu1 %v650_v47 }
 0x200   : > { %1659 = vmatprep.subr.bf16.mxu1 %v1930_v0 }
 0x206   : > { %1650 = vmatmul.mubr.msk.bf16.vlgmr.msra.gmra.mrb[16].mxu1 %vm532_vm2, %v642_v48 }
 0x207   : > { %1661 = vmatprep.mubr.msk.bf16.mxu1 %vm1931_vm0, %v1930_v0 }
 0x266   : > { %v573_v49 = vpop.f32.mrb[12].mxu1 }
 0x267   : > { %v579_v50 = vmul.f32 0.35355338, %v573_v49  ;;  %v1639_v51 = vpop.f32.mrb[13].mxu1 }
 0x268   : > { %v576_v52 = vpop.f32.mrb[14].mxu1 }
 0x269   : > { %v1640_v53 = vpop.f32.mrb[15].mxu1  ;;  %v580_v54 = vsel %vm532_vm2, %v579_v50, -inf  ;;  %v1539_v52 = vcombine.low %v2084_v1, %v2084_v1 }
 0x26a   : > { %581 = vmax.xlane.f32.xlu0 %v580_v54 }
 0x2d9   : > { %v686_v55 = vpop.f32.mrb[16].mxu1 }
 0x2da   : > { %v692_v56 = vmul.f32 0.35355338, %v686_v55  ;;  %v1651_v57 = vpop.f32.mrb[17].mxu1 }
 0x2db   : > { %v689_v58 = vpop.f32.mrb[18].mxu1 }
 0x2dc   : > { %v1652_v59 = vpop.f32.mrb[19].mxu1  ;;  %v693_v60 = vsel %vm532_vm2, %v692_v56, -inf }
 0x2dd   : > { %694 = vmax.xlane.f32.xlu1 %v693_v60 }
 0x2ee   : > { %706 = vrot.lane.b32.xlu1 %v2157_v44, %s1934_s17  ;;  %s335_s17 = sand.u32 1, %s1917_s28  }
 0x2ef   : > { %s1410_s24 = scalar_lea.sflag [#allocation4], %s335_s17 }
 0x2f2   : > { %855 = vrot.lane.b32.xlu1 %v2144_v34, %s1935_s13 }
 0x2f6   : > { %853 = vrot.lane.b32.xlu1 %v2138_v26, %s1935_s13 }
 0x2f7   : > { %v582_v61 = vpop.xlane.xlu0 %581 }
 0x2f8   : > { %v583_v62 = vsub.f32 %v579_v50, %v582_v61 }
 0x2fa   : > { %v584_v63 = vmul.f32 1.442695, %v583_v62 }
 0x2fc   : > { %1811 = vpow2.f32 %v584_v63 }
 0x306   : > { %v1812_v4 = vpop.eup %1811 }
 0x307   : > { %v586_v7 = vsel %vm532_vm2, %v1812_v4, 0.0 }
 0x308   : > { %587 = vadd.xlane.f32.xlu0 %v586_v7 }
 0x36a   : > { %v695_v8 = vpop.xlane.xlu1 %694 }
 0x36b   : > { %v696_v9 = vsub.f32 %v692_v56, %v695_v8 }
 0x36d   : > { %v697_v10 = vmul.f32 1.442695, %v696_v9 }
 0x36e   : > { %v707_v18 = vpop.permute.xlu1 %706 }
 0x36f   : > { %1813 = vpow2.f32 %v697_v10  ;;  %v712_v21 = vsel %vm595_vm3, %v707_v18, 0 }
 0x372   : > { %v856_v32 = vpop.permute.xlu1 %855 }
 0x373   : > { %v861_v38 = vsel %vm532_vm2, %v856_v32, 0 }
 0x376   : > { %v854_v40 = vpop.permute.xlu1 %853 }
 0x379   : > { %v1814_v11 = vpop.eup %1813 }
 0x37a   : > { %v699_v12 = vsel %vm532_vm2, %v1814_v11, 0.0 }
 0x37b   : > { %700 = vadd.xlane.f32.xlu0 %v699_v12 }
 0x391   : > { %756 = vrot.lane.b32.xlu0 %v1537_v14, %s1936_s18 }
 0x395   : > { %v588_v13 = vpop.xlane.xlu0 %587 }
 0x396   : > { %1815 = vrcp.f32 %v588_v13 }
 0x3a0   : > { %v1816_v15 = vpop.eup %1815 }
 0x3a1   : > { %v590_v17 = vmul.f32 %v1816_v15, %v1812_v4 }
 0x3a3   : > { %v591_v19 = vpack.c.bf16 %v590_v17, %v590_v17 }
 0x3a5   : > { %1644 = vmatmul.mubr.msk.bf16.vlgmr.msra.gmra.mrb[0].mxu0 %vm532_vm2, %v591_v19 }
 0x3a6   : > { %1654 = vmatpush3.bf16.msra.mxu0 %v712_v21  ;;  %1655 = vmatprep.mubr.msk.bf16.mxu0 %vm1931_vm0, %v1930_v0 }
 0x3a7   : > { %1665 = vmatprep.subr.bf16.mxu0 %v1930_v0 }
 0x408   : > { %v701_v22 = vpop.xlane.xlu0 %700 }
 0x409   : > { %1817 = vrcp.f32 %v701_v22 }
 0x40c   : > { %v757_v2 = vpop.permute.xlu0 %756 }
 0x40d   : > { %v762_v23 = vsel %vm595_vm3, %v757_v2, 0 }
 0x40e   : > { %1660 = vmatpush3.bf16.msra.mxu1 %v762_v23 }
 0x40f   : > { %1671 = vmatprep.subr.bf16.mxu1 %v1930_v0 }
 0x413   : > { %v1818_v24 = vpop.eup %1817 }
 0x414   : > { %v703_v25 = vmul.f32 %v1818_v24, %v1814_v11 }
 0x416   : > { %v704_v27 = vpack.c.bf16 %v703_v25, %v703_v25  ;;  %v1543_v25 = vcombine.low %v2094_v3, %v2094_v3 }
 0x418   : > { %1656 = vmatmul.mubr.msk.bf16.vlgmr.msra.gmra.mrb[4].mxu0 %vm532_vm2, %v704_v27 }
 0x419   : > { %1667 = vmatprep.mubr.msk.bf16.mxu0 %vm1931_vm0, %v1930_v0 }
 0x478   : > { %v633_v28 = vpop.f32.mrb[0].mxu0 }
 0x479   : > { %v1645_v29 = vpop.f32.mrb[1].mxu0  ;;  %v639_v58 = vpack.c.bf16 %v633_v28, %v633_v28 }
 0x47a   : > { %v636_v30 = vpop.f32.mrb[2].mxu0 }
 0x47b   : > { %v1646_v31 = vpop.f32.mrb[3].mxu0 }
 0x4eb   : > { %v748_v33 = vpop.f32.mrb[4].mxu0 }
 0x4ec   : > { %v754_v35 = vpack.c.bf16 %v748_v33, %v748_v33  ;;  %v1657_v36 = vpop.f32.mrb[5].mxu0 }
 0x4ed   : > { %v751_v37 = vpop.f32.mrb[6].mxu0 }
 0x4ee   : > { %v1658_v39 = vpop.f32.mrb[7].mxu0  ;;  %1662 = vmatmul.mubr.msk.bf16.vlgmr.msra.gmra.mrb[20].mxu1 %vm532_vm2, %v754_v35  ;;  %v1547_v35 = vcombine.low %v2101_v5, %v2101_v5 }
 0x4ef   : > { %1672 = vmatpush3.bf16.xpose.msra.mxu1 %v861_v38  ;;  %1673 = vmatprep.mubr.msk.bf16.mxu1 %vm1931_vm0, %v1930_v0 }
 0x4f0   : > { %1683 = vmatprep.subr.bf16.mxu1 %v1930_v0 }
 0x4f6   : > { %1674 = vmatmul.mubr.msk.bf16.vlgmr.msra.gmra.mrb[24].mxu1 %vm532_vm2, %v854_v40 }
 0x4f7   : > { %1685 = vmatprep.mubr.msk.bf16.mxu1 %vm1931_vm0, %v1930_v0 }
 0x5c1   : > { %v798_v41 = vpop.f32.mrb[20].mxu1 }
 0x5c2   : > { %v1663_v42 = vpop.f32.mrb[21].mxu1 }
 0x5c3   : > { %v801_v43 = vpop.f32.mrb[22].mxu1 }
 0x5c4   : > { %v1664_v45 = vpop.f32.mrb[23].mxu1 }
 0x5c9   : > { %v897_v46 = vpop.f32.mrb[24].mxu1 }
 0x5ca   : > { %v903_v47 = vmul.f32 0.35355338, %v897_v46  ;;  %v1675_v48 = vpop.f32.mrb[25].mxu1 }
 0x5cb   : > { %v900_v49 = vpop.f32.mrb[26].mxu1 }
 0x5cc   : > { %v1676_v50 = vpop.f32.mrb[27].mxu1  ;;  %v904_v51 = vsel %vm532_vm2, %v903_v47, -inf }
 0x5cd   : > { %905 = vmax.xlane.f32.xlu0 %v904_v51 }
 0x5e3   : > { %805 = vrot.lane.b32.xlu0 %v1539_v52, %s1936_s18 }
 0x5e7   : > { %1017 = vrot.lane.b32.xlu0 %v2144_v34, %s1937_s21 }
 0x65a   : > { %v906_v53 = vpop.xlane.xlu0 %905 }
 0x65b   : > { %v907_v54 = vsub.f32 %v903_v47, %v906_v53  ;;  %v1179_v53 = vsub.s32 3, %v2129_v16 }
 0x65d   : > { %v908_v55 = vmul.f32 1.442695, %v907_v54  ;;  %v1180_v54 = vrot.slane %v2135_v20, %v1179_v53  ;;  %v1405_v53 = vsub.s32 7, %v2129_v16 }
 0x65e   : > { %v806_v56 = vpop.permute.xlu0 %805 }
 0x65f   : > { %1819 = vpow2.f32 %v908_v55  ;;  %v811_v57 = vsel %vm595_vm3, %v806_v56, 0 }
 0x660   : > { %1666 = vmatpush3.bf16.msra.mxu0 %v811_v57 }
 0x661   : > { %1677 = vmatprep.subr.bf16.mxu0 %v1930_v0 }
 0x662   : > { %v1018_v4 = vpop.permute.xlu0 %1017 }
 0x663   : > { %1668 = vmatmul.mubr.msk.bf16.vlgmr.msra.gmra.mrb[8].mxu0 %vm532_vm2, %v639_v58  ;;  %v1023_v8 = vsel %vm532_vm2, %v1018_v4, 0 }
 0x664   : > { %1679 = vmatprep.mubr.msk.bf16.mxu0 %vm1931_vm0, %v1930_v0 }
 0x669   : > { %v1820_v1 = vpop.eup %1819 }
 0x66a   : > { %v910_v59 = vsel %vm532_vm2, %v1820_v1, 0.0 }
 0x66b   : > { %911 = vadd.xlane.f32.xlu1 %v910_v59 }
 0x67c   : > { %916 = vrot.lane.b32.xlu1 %v2157_v44, %s1935_s13  ;;  %s1524_s13 = sshll.u32 %s335_s17, 3 }
 0x680   : > { %1015 = vrot.lane.b32.xlu1 %v2138_v26, %s1937_s21 }
 0x6f8   : > { %v912_v34 = vpop.xlane.xlu1 %911 }
 0x6f9   : > { %1821 = vrcp.f32 %v912_v34 }
 0x6fc   : > { %v917_v60 = vpop.permute.xlu1 %916 }
 0x6fd   : > { %v922_v61 = vsel %vm595_vm3, %v917_v60, 0 }
 0x6fe   : > { %1678 = vmatpush3.bf16.msra.mxu0 %v922_v61 }
 0x6ff   : > { %1689 = vmatprep.subr.bf16.mxu0 %v1930_v0 }
 0x700   : > { %v1016_v26 = vpop.permute.xlu1 %1015 }
 0x703   : > { %v1822_v62 = vpop.eup %1821 }
 0x704   : > { %v914_v63 = vmul.f32 %v1822_v62, %v1820_v1 }
 0x706   : > { %v915_v7 = vpack.c.bf16 %v914_v63, %v914_v63 }
 0x708   : > { %1680 = vmatmul.mubr.msk.bf16.vlgmr.msra.gmra.mrb[12].mxu0 %vm532_vm2, %v915_v7 }
 0x709   : > { %1690 = vmatpush3.bf16.xpose.msra.mxu0 %v1023_v8  ;;  %1691 = vmatprep.mubr.msk.bf16.mxu0 %vm1931_vm0, %v1930_v0  ;;  %v1801_v8 = vld [vmem:[%s2358_s4] sm:$0xff]  }
 0x70a   : > { %1701 = vmatprep.subr.bf16.mxu0 %v1930_v0 }
 0x710   : > { %1692 = vmatmul.mubr.msk.bf16.vlgmr.msra.gmra.mrb[16].mxu0 %vm532_vm2, %v1016_v26  ;;  %v1802_v26 = vld [vmem:[%s2358_s4 + $0x8] sm:$0xff]  }
 0x711   : > { %1703 = vmatprep.mubr.msk.bf16.mxu0 %vm1931_vm0, %v1930_v0 }
 0x736   : > { %v847_v9 = vpop.f32.mrb[8].mxu0 }
 0x737   : > { %v848_v10 = vadd.f32 %v847_v9, %v798_v41  ;;  %v1669_v11 = vpop.f32.mrb[9].mxu0  ;;  %v1804_v9 = vld [vmem:[%s2359_s5 + $0x8] sm:$0xff]  }
 0x738   : > { %v850_v12 = vpop.f32.mrb[10].mxu0  ;;  %v1806_v11 = vld [vmem:[%s2359_s5 + $0x18] sm:$0xff]  }
 0x739   : > { %v1670_v13 = vpop.f32.mrb[11].mxu0  ;;  %v1807_v12 = vld [vmem:[%s2359_s5 + $0x20] sm:$0xff]  }
 0x73a   : > { %v1808_v13 = vld [vmem:[%s2359_s5 + $0x28] sm:$0xff]  }
 0x7db   : > { %v958_v14 = vpop.f32.mrb[12].mxu0 }
 0x7dc   : > { %v1681_v15 = vpop.f32.mrb[13].mxu0  ;;  %v964_v32 = vpack.c.bf16 %v958_v14, %v958_v14 }
 0x7dd   : > { %v961_v17 = vpop.f32.mrb[14].mxu0 }
 0x7de   : > { %v1682_v18 = vpop.f32.mrb[15].mxu0 }
 0x7df   : > { %v1199_v18 = vsub.s32 4, %v2129_v16 }
 0x7e3   : > { %v1059_v19 = vpop.f32.mrb[16].mxu0 }
 0x7e4   : > { %v1065_v21 = vmul.f32 0.35355338, %v1059_v19  ;;  %v1693_v22 = vpop.f32.mrb[17].mxu0  ;;  %v1204_v19 = vsub.s32 5, %v2129_v16 }
 0x7e5   : > { %v1062_v2 = vpop.f32.mrb[18].mxu0 }
 0x7e6   : > { %v1694_v23 = vpop.f32.mrb[19].mxu0  ;;  %v1066_v24 = vsel %vm532_vm2, %v1065_v21, -inf }
 0x7e7   : > { %1067 = vmax.xlane.f32.xlu0 %v1066_v24  ;;  %v1205_v23 = vrot.slane %v2135_v20, %v1204_v19 }
 0x7fd   : > { %966 = vrot.lane.b32.xlu0 %v1543_v25, %s1936_s18 }
 0x801   : > { %1128 = vrot.lane.b32.xlu0 %v1547_v35, %s1936_s18  ;;  %s1563_s18 = sshll.u32 %s2005_s9, 7  ;;  %s1938_s9 = smov [#allocation5]  }
 0x802   : > { %s2311_s23 = scalar_lea.hbm %s2362_s8, %s1563_s18  ;;  %s1863_s26 = sshll.u32 %s1938_s9, 4  ;;  %s1864_s26 = int_to_ptr.vmem [resolvable:$false] %s1863_s26 }
 0x803   : > { %s1865_s10 = scalar_lea.vmem %s1864_s26, 256 }
 0x874   : > { %v1068_v27 = vpop.xlane.xlu0 %1067 }
 0x875   : > { %v1069_v28 = vsub.f32 %v1065_v21, %v1068_v27  ;;  %v1200_v21 = vrot.slane %v2135_v20, %v1199_v18 }
 0x877   : > { %v1070_v29 = vmul.f32 1.442695, %v1069_v28  ;;  %v1809_v28 = vld [vmem:[%s2359_s5 + $0x30] sm:$0xff]  }
 0x878   : > { %v967_v30 = vpop.permute.xlu0 %966 }
 0x879   : > { %1823 = vpow2.f32 %v1070_v29  ;;  %v972_v31 = vsel %vm595_vm3, %v967_v30, 0  ;;  %v1810_v29 = vld [vmem:[%s2359_s5 + $0x38] sm:$0xff]   ;;  %v1549_v30 = vld [vmem:[%s2361_s7] ss:$0 sm:$0xff] }
 0x87a   : > { %1684 = vmatpush3.bf16.msra.mxu1 %v972_v31 }
 0x87b   : > { %1695 = vmatprep.subr.bf16.mxu1 %v1930_v0 }
 0x87d   : > { %1686 = vmatmul.mubr.msk.bf16.vlgmr.msra.gmra.mrb[28].mxu1 %vm532_vm2, %v964_v32 }
 0x87e   : > { %1697 = vmatprep.mubr.msk.bf16.mxu1 %vm1931_vm0, %v1930_v0 }
 0x883   : > { %v1824_v33 = vpop.eup %1823 }
 0x884   : > { %v1072_v3 = vsel %vm532_vm2, %v1824_v33, 0.0 }
 0x885   : > { %1073 = vadd.xlane.f32.xlu1 %v1072_v3 }
 0x896   : > { %1078 = vrot.lane.b32.xlu1 %v2157_v44, %s1937_s21  ;;  %v1129_v44 = vpop.permute.xlu0 %1128  ;;  %s337_s21 = scalar_lea.vmem [#allocation5], %s1524_s13 }
 0x897   : > { %v1134_v5 = vsel %vm595_vm3, %v1129_v44, 0  ;;  %s1423_s22 = sshll.u32 %s337_s21, 4  ;;  %s2313_s22 = int_to_ptr.vmem [resolvable:$true] %s1423_s22 }
 0x898   : > { %1702 = vmatpush3.bf16.msra.mxu0 %v1134_v5  ;;  %s1859_s25 = scalar_lea.vmem %s2313_s22, 128  ;;  %p1866_p2 = scmp.lt.s32.totalorder %s2313_s22, %s1864_s26 }
 0x899   : > { %1715 = vmatprep.subr.bf16.mxu0 %v1930_v0  ;;  %p1860_p6 = scmp.ne.s32.totalorder %s2313_s22, %s1859_s25  ;;  %p1867_p3 = scmp.lt.s32.totalorder %s1865_s10, %s1859_s25 }
 0x89b   : > { %p1861_p10 = pnand %p1860_p6, %p2373_p9  ;;  %p1868_p4 = por %p1867_p3, %p1866_p2 }
 0x89d   : > { %p1862_p12 = pneg %p1861_p10 }
 0x89f   : > { %p1869_p7 = pnand %p1868_p4, %p1862_p12 }
 0x912   : > { %v1074_v36 = vpop.xlane.xlu1 %1073 }
 0x913   : > { %1825 = vrcp.f32 %v1074_v36 }
 0x916   : > { %v1079_v37 = vpop.permute.xlu1 %1078 }
 0x917   : > { %v1084_v38 = vsel %vm595_vm3, %v1079_v37, 0 }
 0x918   : > { %1696 = vmatpush3.bf16.msra.mxu1 %v1084_v38  ;;  %v1553_v38 = vld [vmem:[#allocation2 + $0x8] ss:$0 sm:$0xff] }
 0x919   : > { %1707 = vmatprep.subr.bf16.mxu1 %v1930_v0 }
 0x91d   : > { %v1826_v39 = vpop.eup %1825 }
 0x91e   : > { %v1076_v40 = vmul.f32 %v1826_v39, %v1824_v33 }
 0x920   : > { %v1077_v41 = vpack.c.bf16 %v1076_v40, %v1076_v40 }
 0x922   : > { %1698 = vmatmul.mubr.msk.bf16.vlgmr.msra.gmra.mrb[32].mxu1 %vm532_vm2, %v1077_v41 }
 0x923   : > { %1711 = vmatprep.mubr.msk.bf16.mxu1 %vm1931_vm0, %v1930_v0  ;;  %1708 = vmatpush3.bf16.msra.mxu1 %v1801_v8 }
 0x924   : > { %1709 = vmatprep.subr.bf16.mxu1 %v1930_v0 }
 0x927   : > { %1710 = vmatpush3.bf16.msra.mxu1 %v1802_v26 }
 0x950   : > { %v1008_v42 = vpop.f32.mrb[28].mxu1 }
 0x951   : > { %v1014_v43 = vadd.f32 %v1008_v42, %v848_v10  ;;  %v1687_v45 = vpop.f32.mrb[29].mxu1  ;;  %v1805_v10 = vld [vmem:[%s2359_s5 + $0x10] sm:$0xff]  }
 0x952   : > { %v1011_v46 = vpop.f32.mrb[30].mxu1 }
 0x953   : > { %v1688_v47 = vpop.f32.mrb[31].mxu1 }
 0x9f5   : > { %v1120_v48 = vpop.f32.mrb[32].mxu1 }
 0x9f6   : > { %v1126_v49 = vpack.c.bf16 %v1120_v48, %v1120_v48  ;;  %v1699_v50 = vpop.f32.mrb[33].mxu1 }
 0x9f7   : > { %v1123_v51 = vpop.f32.mrb[34].mxu1 }
 0x9f8   : > { %v1700_v52 = vpop.f32.mrb[35].mxu1  ;;  %1704 = vmatmul.mubr.msk.bf16.vlgmr.msra.gmra.mrb[20].mxu0 %vm532_vm2, %v1126_v49 }
 0x9f9   : > { %1731 = vmatprep.mubr.msk.bf16.mxu0 %vm1931_vm0, %v1930_v0  ;;  %v1400_v52 = vsub.s32 6, %v2129_v16 }
 0xacb   : > { %v1170_v55 = vpop.f32.mrb[20].mxu0 }
 0xacc   : > { %v1176_v56 = vadd.f32 %v1170_v55, %v1014_v43  ;;  %v1705_v57 = vpop.f32.mrb[21].mxu0 }
 0xacd   : > { %v1173_v58 = vpop.f32.mrb[22].mxu0  ;;  %v1406_v57 = vrot.slane %v2135_v20, %v1405_v53 }
 0xace   : > { %v1181_v1 = vadd.f32 %v1180_v54, %v1176_v56  ;;  %v1706_v59 = vpop.f32.mrb[23].mxu0  ;;  %v1401_v54 = vrot.slane %v2135_v20, %v1400_v52 }
 0xad0   : > { %v1182_v34 = vadd.f32 %v1181_v1, %v2103_v6  ;;  %v1803_v6 = vld [vmem:[%s2359_s5] sm:$0xff]  }
 0xad1   : > { %1716 = vmatpush3.bf16.msra.mxu0 %v1803_v6 }
 0xad2   : > { %v1183_v60 = vsel %vm377_vm1, %v1182_v34, 0.0  ;;  %1717 = vmatprep.subr.bf16.mxu0 %v1930_v0 }
 0xad3   : > { %1184 = vadd.xlane.f32.xlu1 %v1183_v60 }
 0xad5   : > { %1718 = vmatpush3.bf16.msra.mxu0 %v1804_v9 }
 0xad6   : > { %1719 = vmatprep.subr.bf16.mxu0 %v1930_v0 }
 0xad9   : > { %1720 = vmatpush3.bf16.msra.mxu0 %v1805_v10 }
 0xada   : > { %1721 = vmatprep.subr.bf16.mxu0 %v1930_v0 }
 0xadd   : > { %1722 = vmatpush3.bf16.msra.mxu0 %v1806_v11 }
 0xade   : > { %1723 = vmatprep.subr.bf16.mxu0 %v1930_v0 }
 0xae1   : > { %1724 = vmatpush3.bf16.msra.mxu0 %v1807_v12 }
 0xae2   : > { %1725 = vmatprep.subr.bf16.mxu0 %v1930_v0 }
 0xae5   : > { %1726 = vmatpush3.bf16.msra.mxu0 %v1808_v13 }
 0xae6   : > { %1727 = vmatprep.subr.bf16.mxu0 %v1930_v0 }
 0xae9   : > { %1728 = vmatpush3.bf16.msra.mxu0 %v1809_v28 }
 0xaea   : > { %1729 = vmatprep.subr.bf16.mxu0 %v1930_v0 }
 0xaed   : > { %1730 = vmatpush3.bf16.msra.mxu0 %v1810_v29 }
 0xb60   : > { %v1185_v61 = vpop.xlane.xlu1 %1184 }
 0xb61   : > { %v1187_v62 = vmul.f32 0.03125, %v1185_v61 }
 0xb63   : > { %v1188_v63 = vsub.f32 %v1182_v34, %v1187_v62 }
 0xb65   : > { %v1189_v4 = vmul.f32 %v1188_v63, %v1188_v63 }
 0xb67   : > { %v1190_v7 = vsel %vm377_vm1, %v1189_v4, 0.0 }
 0xb68   : > { %1191 = vadd.xlane.f32.xlu0 %v1190_v7 }
 0xbf5   : > { %v1192_v14 = vpop.xlane.xlu0 %1191 }
 0xbf6   : > { %v1193_v15 = vmul.f32 0.03125, %v1192_v14 }
 0xbf8   : > { %v1194_v17 = vadd.f32 1e-05, %v1193_v15 }
 0xbfa   : > { %1827 = vrsqrt.f32 %v1194_v17 }
 0xc04   : > { %v1828_v22 = vpop.eup %1827 }
 0xc05   : > { %v1196_v2 = vmul.f32 %v1828_v22, %v1188_v63 }
 0xc07   : > { %v1201_v24 = vmul.f32 %v1200_v21, %v1196_v2 }
 0xc09   : > { %v1206_v25 = vadd.f32 %v1205_v23, %v1201_v24 }
 0xc0b   : > { %v1207_v27 = vpack.c.bf16 %v1206_v25, %v1206_v25 }
 0xc0d   : > { %1712 = vmatmul.mubr.msk.bf16.vlgmr.msra.gmra.mrb[36].mxu1 %vm377_vm1, %v1207_v27 }
 0xce0   : > { %v1268_v31 = vpop.f32.mrb[36].mxu1 }
 0xce1   : > { %v1269_v32 = vadd.f32 %v1549_v30, %v1268_v31  ;;  %v1713_v33 = vpop.f32.mrb[37].mxu1 }
 0xce2   : > { %v1271_v3 = vpop.f32.mrb[38].mxu1 }
 0xce3   : > { %v1274_v35 = vmax.f32 %v1269_v32, 0.0  ;;  %v1714_v36 = vpop.f32.mrb[39].mxu1 }
 0xce5   : > { %v1275_v37 = vpack.c.bf16 %v1274_v35, %v1274_v35 }
 0xce7   : > { %1732 = vmatmul.mubr.bf16.vlgmr.msra.gmra.mrb[24].mxu0 %v1275_v37 }
 0xdba   : > { %v1378_v39 = vpop.f32.mrb[24].mxu0 }
 0xdbb   : > { %v1379_v0 = vadd.f32 %v1553_v38, %v1378_v39  ;;  %v1733_v40 = vpop.f32.mrb[25].mxu0 }
 0xdbc   : > { %v1381_v41 = vpop.f32.mrb[26].mxu0 }
 0xdbd   : > { %v1734_v44 = vpop.f32.mrb[27].mxu0  ;;  %v1384_v5 = vadd.f32 %v1379_v0, %v1206_v25 }
 0xdbf   : > { %v1385_v42 = vsel %vm377_vm1, %v1384_v5, 0.0 }
 0xdc0   : > { %1386 = vadd.xlane.f32.xlu0 %v1385_v42 }
 0xe4d   : > { %v1387_v43 = vpop.xlane.xlu0 %1386 }
 0xe4e   : > { %v1388_v45 = vmul.f32 0.03125, %v1387_v43 }
 0xe50   : > { %v1389_v46 = vsub.f32 %v1384_v5, %v1388_v45 }
 0xe52   : > { %v1390_v47 = vmul.f32 %v1389_v46, %v1389_v46 }
 0xe54   : > { %v1391_v48 = vsel %vm377_vm1, %v1390_v47, 0.0 }
 0xe55   : > { %1392 = vadd.xlane.f32.xlu1 %v1391_v48 }
 0xee2   : > { %v1393_v49 = vpop.xlane.xlu1 %1392 }
 0xee3   : > { %v1394_v50 = vmul.f32 0.03125, %v1393_v49 }
 0xee5   : > { %v1395_v51 = vadd.f32 1e-05, %v1394_v50 }
 0xee7   : > { %1829 = vrsqrt.f32 %v1395_v51 }
 0xef1   : > { %v1830_v55 = vpop.eup %1829 }
 0xef2   : > { %v1397_v56 = vmul.f32 %v1830_v55, %v1389_v46 }
 0xef4   : > { %v1402_v58 = vmul.f32 %v1401_v54, %v1397_v56 }
 0xef6   : > { %v1407_v1 = vadd.f32 %v1406_v57, %v1402_v58 }
 0xef8   : > { %1408 = vst.msk [vmem:[%s337_s21] sm:$0xff] %vm377_vm1, %v1407_v1 }
 0xef9   : > { %1872 = shalt.err (!%p1869_p7)
}
 0xefa   : > { %s1873_s12 = scalar_lea.hbm %s2311_s23, 128  ;;  %s1877_s18 = scalar_lea.hbm %s2362_s8, 256 }
 0xefb   : > { %p1874_p8 = scmp.ne.s32.totalorder %s2311_s23, %s1873_s12  ;;  %p1878_p1 = scmp.lt.u32.totalorder %s2311_s23, %s2362_s8 }
 0xefc   : > { %p1879_p0 = scmp.lt.u32.totalorder %s1877_s18, %s1873_s12  ;;  %p1881_p6 = scmp.lt.u32.totalorder %s1873_s12, %s2311_s23 }
 0xefd   : > { %p1875_p11 = pnand %p1874_p8, %p2373_p9 }
 0xefe   : > { %p1880_p5 = por %p1879_p0, %p1878_p1 }
 0xeff   : > { %p1876_p13 = pneg %p1875_p11 }
 0xf00   : > { %p1882_p10 = por %p1881_p6, %p1880_p5 }
 0xf02   : > { %p1883_p12 = pnand %p1882_p10, %p1876_p13 }
 0xf04   : > { %1886 = shalt.err (!%p1883_p12)
}
 0xf05   : > { %1739 = dma.vmem_to_hbm [thread:$0]  (%p2373_p9), %s2313_s22, 128, %s2311_s23, %s1410_s24  }
 0xf06 PF: > { %p1751_p2 = scmp.ge.s32.totalorder %s1925_s30, 2  ;;  %s1435_s20 = sand.u32 1, %s1913_s27  }
 0xf07   : > { %p2374_p3 = scmp.ne.s32.totalorder %s2367_s16, 0  ;;  %s1436_s25 = scalar_lea.sflag [#allocation4], %s1435_s20 }
 0xf09   : > { %p1746_p4 = pnand %p1751_p2, %p2374_p3 }
 0xf0b   : > { %1908 = dma.done.wait (!%p1746_p4), %s1436_s25, 128  }
 0xf0c   : > { %1910 = vsyncadd (!%p1746_p4), %s1436_s25, 4294967168  ;;  %p19_p7 = scmp.ge.s32.totalorder %s2009_s11, 4   ;;  %s2375_s27 = smov %s1917_s28 }
 0xf0d   : > { %s2376_s28 = smov %s1921_s29  ;;  %s2377_s29 = smov %s2020_s14 }
 0xf0e   : > { %s2378_s30 = smov %s2009_s11  ;;  %21 = sbr.rel (!%p19_p7) target bundleno = 4 (0x4), region = 98 }
 0xf15   :  { %1441 = vsyncpa [#allocation3], 1 }
 0xf16   :  { %1443 = vsyncpa [#allocation3 + $0x1], 1 }
 0xf17   :  { %1444 = vsyncpa [#allocation4], 1 }
 0xf18   :  { %1446 = vsyncpa [#allocation4 + $0x1], 1 }

</bundles_post_ra>
